<compile_context>
chip_gen: v6e
topology: v6e:2x2x1
jax: 0.10.0
libtpu: 0.0.40
codegen_flags: <defaults>
</compile_context>

<pallas_src>
import functools

import jax
import jax.numpy as jnp
from jax.experimental import pallas as pl
from jax.experimental.pallas import tpu as pltpu

EPS = 1e-5


def _cbn_kernel(xr_ref, xi_ref, gr_ref, br_ref, gi_ref, bi_ref,
                or_ref, oi_ref, *, inv_l, eps):
    """Fused real+imag BatchNorm2d on one channel tile.

    xr_ref/xi_ref/or_ref/oi_ref: (N, TC, HW) f32;  gr/br/gi/bi: (TC, 1) f32.
    """

    def bn(x_ref, g_ref, b_ref, o_ref):
        # Pass 1: per-channel mean.  Batch axis reduces with VPU adds, the
        # lane (HW) axis with the XLU; both hide under the HBM DMA.
        s = jnp.sum(jnp.sum(x_ref[...], axis=0), axis=-1, keepdims=True)  # (TC,1)
        mean = s * inv_l                                   # hoisted 1/L multiply

        # Pass 2: centered (two-pass) *biased* variance — robust when
        # |mean| >> std.  Block re-read from VMEM; the centered value is
        # consumed entirely by the reduction.
        d = x_ref[...] - mean[None]                                       # (N,TC,HW)
        v = jnp.sum(jnp.sum(d * d, axis=0), axis=-1, keepdims=True) * inv_l
        inv_std = jax.lax.rsqrt(v + eps)                                  # EUP

        # Fold gamma/beta with the stats: normalize pass is 2 VPU ops/element.
        scale = g_ref[...] * inv_std                                      # (TC,1)
        bias = b_ref[...] - mean * scale                                  # (TC,1)

        # Pass 3: affine.  Re-read from the ref (cheap vld; keeps live ranges
        # small); full-HW lane-dense unmasked store.
        o_ref[...] = x_ref[...] * scale[None] + bias[None]

    bn(xr_ref, gr_ref, br_ref, or_ref)
    bn(xi_ref, gi_ref, bi_ref, oi_ref)


def _vmem_limit_bytes():
    """Generation-aware scoped-VMEM limit: half of physical VMEM.

    128 MiB parts (v5e/v6e) -> 64 MiB limit; 64 MiB parts (v7x) -> 32 MiB.
    """
    try:
        cap = pltpu.get_tpu_info().vmem_capacity_bytes
    except Exception:
        cap = 64 * 1024 * 1024  # conservative: assume the smallest (v7x-sized) VMEM
    return int(max(32 * 1024 * 1024, min(cap // 2, 64 * 1024 * 1024)))


def _pick_block_channels(C, per_chan_bytes, block_budget_bytes,
                         min_block_bytes=512 * 1024, target_steps=8):
    """Channel tile: divides C, obeys the (8, lane) sublane rule and the VMEM
    budget, and trades tile size for pipeline depth.

    Preference order:
      1) >= target_steps (then >= 4, then >= 2) grid steps with blocks of at
         least ~min_block_bytes (largest such tile) — pipeline depth plus
         2-TensorCore sharding on v7x, blocks still big enough for the HBM
         roofline;
      2) the largest tile that still leaves >= 2 grid steps (small problems);
      3) the largest fitting tile (grid of 1; only when C is tiny).
    Returns None when even the minimal block busts the budget.
    """
    if C % 8 != 0:
        # Sublane full-dim exception: one block covering all channels.
        return C if C * per_chan_bytes <= block_budget_bytes else None

    cands = [tc for tc in range(8, C + 1, 8)
             if C % tc == 0 and tc * per_chan_bytes <= block_budget_bytes]
    if not cands:
        return None  # even an 8-channel block busts the VMEM budget

    def steps(tc):
        return C // tc

    for want in (target_steps, 4, 2):
        tier = [tc for tc in cands
                if steps(tc) >= want and tc * per_chan_bytes >= min_block_bytes]
        if tier:
            return max(tier)
    tier = [tc for tc in cands if steps(tc) >= 2]
    if tier:
        return max(tier)
    return max(cands)


def cbatchnorm2d(x, gamma_r, beta_r, gamma_i, beta_i, eps=EPS, block_c=None):
    """Complex batch norm. x: (N, C, H, W) complex64 -> (N, C, H, W) complex64."""
    N, C, H, W = x.shape
    HW = H * W
    L = N * HW
    per_chan_bytes = N * HW * 4  # one f32 plane, one channel

    # complex64 -> two planar f32 views as (N, C, H*W) (free reshape, no
    # transpose).  A zero-copy bitcast is not expressible (see module TODO);
    # this split + the final recombine are one fused XLA pass each.
    xr = jnp.real(x).reshape(N, C, HW)
    xi = jnp.imag(x).reshape(N, C, HW)

    gr = jnp.asarray(gamma_r, jnp.float32).reshape(C, 1)
    br = jnp.asarray(beta_r, jnp.float32).reshape(C, 1)
    gi = jnp.asarray(gamma_i, jnp.float32).reshape(C, 1)
    bi = jnp.asarray(beta_i, jnp.float32).reshape(C, 1)

    vmem_limit = _vmem_limit_bytes()
    # Working set: 2 inputs + 2 outputs, each double-buffered by the BlockSpec
    # pipeline (= 8x block_bytes), kept under ~75% of the scoped limit to leave
    # headroom for the per-channel params and kernel temporaries.
    block_budget = (vmem_limit * 3) // (4 * 8)

    if block_c is None:
        block_c = _pick_block_channels(C, per_chan_bytes, block_budget)
        if block_c is None:
            # TODO(synk): very large N*H*W needs an H*W-split two-phase-stats
            # path (or pl.Buffered(1) on the x/out specs); not implemented.
            raise NotImplementedError(
                "CBatchNorm2d Pallas kernel: the minimal channel block "
                f"(N={N}, 8, H*W={HW}) needs {8 * per_chan_bytes / 2**20:.1f} MiB, "
                f"exceeding the per-block VMEM budget of "
                f"{block_budget / 2**20:.1f} MiB on this TPU generation."
            )
    assert C % block_c == 0 and (block_c % 8 == 0 or block_c == C), block_c

    grid = (C // block_c,)
    # HW is the lane axis (full-dim block); multiples of 128 give unmasked
    # lane-dense stores — awkward spatial sizes silently pad lanes.
    x_spec = pl.BlockSpec((N, block_c, HW), lambda c: (0, c, 0))
    p_spec = pl.BlockSpec((block_c, 1), lambda c: (c, 0))

    kernel = functools.partial(_cbn_kernel, inv_l=1.0 / L, eps=float(eps))

    yr, yi = pl.pallas_call(
        kernel,
        out_shape=(
            jax.ShapeDtypeStruct((N, C, HW), jnp.float32),
            jax.ShapeDtypeStruct((N, C, HW), jnp.float32),
        ),
        grid=grid,
        in_specs=[x_spec, x_spec, p_spec, p_spec, p_spec, p_spec],
        out_specs=(x_spec, x_spec),
        compiler_params=pltpu.CompilerParams(
            dimension_semantics=("parallel",),
            vmem_limit_bytes=vmem_limit,
            # Let XLA fold the real()/imag() producers into the Mosaic call's
            # operands instead of scheduling them as separate ops.
            allow_input_fusion=[True, True, False, False, False, False],
        ),
    )(xr, xi, gr, br, gi, bi)

    return jax.lax.complex(yr.reshape(N, C, H, W), yi.reshape(N, C, H, W))


def _reference(x, gamma_r, beta_r, gamma_i, beta_i):
    def bn(p, g, b):
        mean = jnp.mean(p, axis=(0, 2, 3), keepdims=True)
        var = jnp.mean((p - mean) ** 2, axis=(0, 2, 3), keepdims=True)
        g = g.reshape(1, -1, 1, 1)
        b = b.reshape(1, -1, 1, 1)
        return g * (p - mean) / jnp.sqrt(var + EPS) + b

    return jax.lax.complex(
        bn(jnp.real(x), gamma_r, beta_r), bn(jnp.imag(x), gamma_i, beta_i)
    )


if __name__ == "__main__":
    key = jax.random.PRNGKey(0)

    def run_case(N, C, H, W, block_c=None):
        k = jax.random.fold_in(key, C * 1000 + N)
        k1, k2 = jax.random.split(k)
        x_real = jax.random.normal(k1, (N, C, H, W), dtype=jnp.float32)
        x_imag = jax.random.normal(k2, (N, C, H, W), dtype=jnp.float32)
        x = jax.lax.complex(x_real, x_imag)  # complex64

        # BatchNorm2d default init is gamma=1, beta=0; perturb so the affine
        # path is exercised deterministically.
        ch = jnp.arange(C, dtype=jnp.float32)
        gamma_r = 1.0 + 0.10 * ch
        beta_r = 0.05 * ch
        gamma_i = 1.0 - 0.05 * ch
        beta_i = -0.02 * ch

        out = cbatchnorm2d(x, gamma_r, beta_r, gamma_i, beta_i, block_c=block_c)
        out = jax.block_until_ready(out)

        ref = _reference(x, gamma_r, beta_r, gamma_i, beta_i)
        assert out.shape == (N, C, H, W) and out.dtype == jnp.complex64
        err = jnp.max(jnp.abs(out - ref))
        assert err < 1e-4, f"max abs err {err}"

    run_case(2, 4, 16, 16)               # C not multiple of 8 -> full-C block
    run_case(2, 16, 16, 16)              # auto picker -> block_c=8, 2-step grid
    run_case(2, 16, 16, 16, block_c=8)   # forced channel tile (same tiled path)
    print("KERNEL_OK")
</pallas_src>

<mosaic_0001>
module attributes {stable_mosaic.version = 11 : i64} {
  func.func @_cbn_kernel(%arg0: i32, %arg1: memref<2x4x256xf32, #tpu.memory_space<vmem>>, %arg2: memref<2x4x256xf32, #tpu.memory_space<vmem>>, %arg3: memref<4x1xf32, #tpu.memory_space<vmem>>, %arg4: memref<4x1xf32, #tpu.memory_space<vmem>>, %arg5: memref<4x1xf32, #tpu.memory_space<vmem>>, %arg6: memref<4x1xf32, #tpu.memory_space<vmem>>, %arg7: memref<2x4x256xf32, #tpu.memory_space<vmem>>, %arg8: memref<2x4x256xf32, #tpu.memory_space<vmem>>) attributes {dimension_semantics = [#tpu.dimension_semantics<parallel>], iteration_bounds = array<i64: 1>, scalar_prefetch = 0 : i64, scratch_operands = 0 : i64, tpu.core_type = #tpu.core_type<tc>, window_params = [{transform_indices = @transform_0, window_bounds = array<i64: 2, 4, 256>}, {transform_indices = @transform_1, window_bounds = array<i64: 2, 4, 256>}, {transform_indices = @transform_2, window_bounds = array<i64: 4, 1>}, {transform_indices = @transform_3, window_bounds = array<i64: 4, 1>}, {transform_indices = @transform_4, window_bounds = array<i64: 4, 1>}, {transform_indices = @transform_5, window_bounds = array<i64: 4, 1>}, {transform_indices = @transform_6, window_bounds = array<i64: 2, 4, 256>}, {transform_indices = @transform_7, window_bounds = array<i64: 2, 4, 256>}]} {
    %c0 = arith.constant 0 : index
    %c0_0 = arith.constant 0 : index
    %c0_1 = arith.constant 0 : index
    %0 = vector.load %arg1[%c0, %c0_0, %c0_1] : memref<2x4x256xf32, #tpu.memory_space<vmem>>, vector<2x4x256xf32>
    %cst = arith.constant dense<0.000000e+00> : vector<4x256xf32>
    %1 = vector.multi_reduction <add>, %0, %cst [0] : vector<2x4x256xf32> to vector<4x256xf32>
    %cst_2 = arith.constant dense<0.000000e+00> : vector<4xf32>
    %2 = vector.multi_reduction <add>, %1, %cst_2 [1] : vector<4x256xf32> to vector<4xf32>
    %3 = vector.shape_cast %2 : vector<4xf32> to vector<4x1xf32>
    %cst_3 = arith.constant 0.001953125 : f32
    %4 = vector.broadcast %cst_3 : f32 to vector<4x1xf32>
    %5 = arith.mulf %3, %4 : vector<4x1xf32>
    %c0_4 = arith.constant 0 : index
    %c0_5 = arith.constant 0 : index
    %c0_6 = arith.constant 0 : index
    %6 = vector.load %arg1[%c0_4, %c0_5, %c0_6] : memref<2x4x256xf32, #tpu.memory_space<vmem>>, vector<2x4x256xf32>
    %7 = vector.shape_cast %5 : vector<4x1xf32> to vector<1x4x1xf32>
    %8 = vector.broadcast %7 : vector<1x4x1xf32> to vector<2x4x256xf32>
    %9 = arith.subf %6, %8 : vector<2x4x256xf32>
    %10 = arith.mulf %9, %9 : vector<2x4x256xf32>
    %cst_7 = arith.constant dense<0.000000e+00> : vector<4x256xf32>
    %11 = vector.multi_reduction <add>, %10, %cst_7 [0] : vector<2x4x256xf32> to vector<4x256xf32>
    %cst_8 = arith.constant dense<0.000000e+00> : vector<4xf32>
    %12 = vector.multi_reduction <add>, %11, %cst_8 [1] : vector<4x256xf32> to vector<4xf32>
    %13 = vector.shape_cast %12 : vector<4xf32> to vector<4x1xf32>
    %cst_9 = arith.constant 0.001953125 : f32
    %14 = vector.broadcast %cst_9 : f32 to vector<4x1xf32>
    %15 = arith.mulf %13, %14 : vector<4x1xf32>
    %cst_10 = arith.constant 9.99999974E-6 : f32
    %16 = vector.broadcast %cst_10 : f32 to vector<4x1xf32>
    %17 = arith.addf %15, %16 : vector<4x1xf32>
    %18 = math.rsqrt %17 : vector<4x1xf32>
    %c0_11 = arith.constant 0 : index
    %c0_12 = arith.constant 0 : index
    %19 = vector.load %arg3[%c0_11, %c0_12] : memref<4x1xf32, #tpu.memory_space<vmem>>, vector<4x1xf32>
    %20 = arith.mulf %19, %18 : vector<4x1xf32>
    %c0_13 = arith.constant 0 : index
    %c0_14 = arith.constant 0 : index
    %21 = vector.load %arg4[%c0_13, %c0_14] : memref<4x1xf32, #tpu.memory_space<vmem>>, vector<4x1xf32>
    %22 = arith.mulf %5, %20 : vector<4x1xf32>
    %23 = arith.subf %21, %22 : vector<4x1xf32>
    %c0_15 = arith.constant 0 : index
    %c0_16 = arith.constant 0 : index
    %c0_17 = arith.constant 0 : index
    %24 = vector.load %arg1[%c0_15, %c0_16, %c0_17] : memref<2x4x256xf32, #tpu.memory_space<vmem>>, vector<2x4x256xf32>
    %25 = vector.shape_cast %20 : vector<4x1xf32> to vector<1x4x1xf32>
    %26 = vector.broadcast %25 : vector<1x4x1xf32> to vector<2x4x256xf32>
    %27 = arith.mulf %24, %26 : vector<2x4x256xf32>
    %28 = vector.shape_cast %23 : vector<4x1xf32> to vector<1x4x1xf32>
    %29 = vector.broadcast %28 : vector<1x4x1xf32> to vector<2x4x256xf32>
    %30 = arith.addf %27, %29 : vector<2x4x256xf32>
    %c0_18 = arith.constant 0 : index
    %c0_19 = arith.constant 0 : index
    %c0_20 = arith.constant 0 : index
    %31 = vector.load %arg7[%c0_18, %c0_19, %c0_20] : memref<2x4x256xf32, #tpu.memory_space<vmem>>, vector<2x4x256xf32>
    tpu.vector_store %arg7[%c0_18, %c0_19, %c0_20], %30 {strides = array<i32>} : memref<2x4x256xf32, #tpu.memory_space<vmem>>, vector<2x4x256xf32>,
    %c0_21 = arith.constant 0 : index
    %c0_22 = arith.constant 0 : index
    %c0_23 = arith.constant 0 : index
    %32 = vector.load %arg2[%c0_21, %c0_22, %c0_23] : memref<2x4x256xf32, #tpu.memory_space<vmem>>, vector<2x4x256xf32>
    %cst_24 = arith.constant dense<0.000000e+00> : vector<4x256xf32>
    %33 = vector.multi_reduction <add>, %32, %cst_24 [0] : vector<2x4x256xf32> to vector<4x256xf32>
    %cst_25 = arith.constant dense<0.000000e+00> : vector<4xf32>
    %34 = vector.multi_reduction <add>, %33, %cst_25 [1] : vector<4x256xf32> to vector<4xf32>
    %35 = vector.shape_cast %34 : vector<4xf32> to vector<4x1xf32>
    %cst_26 = arith.constant 0.001953125 : f32
    %36 = vector.broadcast %cst_26 : f32 to vector<4x1xf32>
    %37 = arith.mulf %35, %36 : vector<4x1xf32>
    %c0_27 = arith.constant 0 : index
    %c0_28 = arith.constant 0 : index
    %c0_29 = arith.constant 0 : index
    %38 = vector.load %arg2[%c0_27, %c0_28, %c0_29] : memref<2x4x256xf32, #tpu.memory_space<vmem>>, vector<2x4x256xf32>
    %39 = vector.shape_cast %37 : vector<4x1xf32> to vector<1x4x1xf32>
    %40 = vector.broadcast %39 : vector<1x4x1xf32> to vector<2x4x256xf32>
    %41 = arith.subf %38, %40 : vector<2x4x256xf32>
    %42 = arith.mulf %41, %41 : vector<2x4x256xf32>
    %cst_30 = arith.constant dense<0.000000e+00> : vector<4x256xf32>
    %43 = vector.multi_reduction <add>, %42, %cst_30 [0] : vector<2x4x256xf32> to vector<4x256xf32>
    %cst_31 = arith.constant dense<0.000000e+00> : vector<4xf32>
    %44 = vector.multi_reduction <add>, %43, %cst_31 [1] : vector<4x256xf32> to vector<4xf32>
    %45 = vector.shape_cast %44 : vector<4xf32> to vector<4x1xf32>
    %cst_32 = arith.constant 0.001953125 : f32
    %46 = vector.broadcast %cst_32 : f32 to vector<4x1xf32>
    %47 = arith.mulf %45, %46 : vector<4x1xf32>
    %cst_33 = arith.constant 9.99999974E-6 : f32
    %48 = vector.broadcast %cst_33 : f32 to vector<4x1xf32>
    %49 = arith.addf %47, %48 : vector<4x1xf32>
    %50 = math.rsqrt %49 : vector<4x1xf32>
    %c0_34 = arith.constant 0 : index
    %c0_35 = arith.constant 0 : index
    %51 = vector.load %arg5[%c0_34, %c0_35] : memref<4x1xf32, #tpu.memory_space<vmem>>, vector<4x1xf32>
    %52 = arith.mulf %51, %50 : vector<4x1xf32>
    %c0_36 = arith.constant 0 : index
    %c0_37 = arith.constant 0 : index
    %53 = vector.load %arg6[%c0_36, %c0_37] : memref<4x1xf32, #tpu.memory_space<vmem>>, vector<4x1xf32>
    %54 = arith.mulf %37, %52 : vector<4x1xf32>
    %55 = arith.subf %53, %54 : vector<4x1xf32>
    %c0_38 = arith.constant 0 : index
    %c0_39 = arith.constant 0 : index
    %c0_40 = arith.constant 0 : index
    %56 = vector.load %arg2[%c0_38, %c0_39, %c0_40] : memref<2x4x256xf32, #tpu.memory_space<vmem>>, vector<2x4x256xf32>
    %57 = vector.shape_cast %52 : vector<4x1xf32> to vector<1x4x1xf32>
    %58 = vector.broadcast %57 : vector<1x4x1xf32> to vector<2x4x256xf32>
    %59 = arith.mulf %56, %58 : vector<2x4x256xf32>
    %60 = vector.shape_cast %55 : vector<4x1xf32> to vector<1x4x1xf32>
    %61 = vector.broadcast %60 : vector<1x4x1xf32> to vector<2x4x256xf32>
    %62 = arith.addf %59, %61 : vector<2x4x256xf32>
    %c0_41 = arith.constant 0 : index
    %c0_42 = arith.constant 0 : index
    %c0_43 = arith.constant 0 : index
    %63 = vector.load %arg8[%c0_41, %c0_42, %c0_43] : memref<2x4x256xf32, #tpu.memory_space<vmem>>, vector<2x4x256xf32>
    tpu.vector_store %arg8[%c0_41, %c0_42, %c0_43], %62 {strides = array<i32>} : memref<2x4x256xf32, #tpu.memory_space<vmem>>, vector<2x4x256xf32>,
    return
  }
  func.func @transform_0(%arg0: i32) -> (i32, i32, i32) {
    %c0_i32 = arith.constant 0 : i32
    %c0_i32_0 = arith.constant 0 : i32
    %c0_i32_1 = arith.constant 0 : i32
    return %c0_i32, %arg0, %c0_i32_0 : i32, i32, i32
  }
  func.func @transform_1(%arg0: i32) -> (i32, i32, i32) {
    %c0_i32 = arith.constant 0 : i32
    %c0_i32_0 = arith.constant 0 : i32
    %c0_i32_1 = arith.constant 0 : i32
    return %c0_i32, %arg0, %c0_i32_0 : i32, i32, i32
  }
  func.func @transform_2(%arg0: i32) -> (i32, i32) {
    %c0_i32 = arith.constant 0 : i32
    %c0_i32_0 = arith.constant 0 : i32
    return %arg0, %c0_i32 : i32, i32
  }
  func.func @transform_3(%arg0: i32) -> (i32, i32) {
    %c0_i32 = arith.constant 0 : i32
    %c0_i32_0 = arith.constant 0 : i32
    return %arg0, %c0_i32 : i32, i32
  }
  func.func @transform_4(%arg0: i32) -> (i32, i32) {
    %c0_i32 = arith.constant 0 : i32
    %c0_i32_0 = arith.constant 0 : i32
    return %arg0, %c0_i32 : i32, i32
  }
  func.func @transform_5(%arg0: i32) -> (i32, i32) {
    %c0_i32 = arith.constant 0 : i32
    %c0_i32_0 = arith.constant 0 : i32
    return %arg0, %c0_i32 : i32, i32
  }
  func.func @transform_6(%arg0: i32) -> (i32, i32, i32) {
    %c0_i32 = arith.constant 0 : i32
    %c0_i32_0 = arith.constant 0 : i32
    %c0_i32_1 = arith.constant 0 : i32
    return %c0_i32, %arg0, %c0_i32_0 : i32, i32, i32
  }
  func.func @transform_7(%arg0: i32) -> (i32, i32, i32) {
    %c0_i32 = arith.constant 0 : i32
    %c0_i32_0 = arith.constant 0 : i32
    %c0_i32_1 = arith.constant 0 : i32
    return %c0_i32, %arg0, %c0_i32_0 : i32, i32, i32
  }
}

</mosaic_0001>

<bundles_post_ra>
// kernel: tpu_custom_call.1
= control target key start
LH: loop header
LB: loop body
LE: loop exit
PB: predicated region body
PF: predicated region fallthrough
CT: control target
= control target key end

     0   :  { %13 = vsyncpa [#allocation3], 0  ;;  %s477_s0 = inlined_call_operand.vmem [shape: f32[2,4,256], index: 0, kind: input, shape index: {}]   ;;  %s478_s1 = inlined_call_operand.hbm [shape: f32[2,4,256], index: 1, kind: input, shape index: {}]   ;;  %s479_s2 = inlined_call_operand.vmem [shape: f32[4,1], index: 2, kind: input, shape index: {}]   ;;  %s480_s3 = inlined_call_operand.vmem [shape: f32[4,1], index: 3, kind: input, shape index: {}]   ;;  %s481_s4 = inlined_call_operand.vmem [shape: f32[4,1], index: 4, kind: input, shape index: {}]   ;;  %s482_s5 = inlined_call_operand.vmem [shape: f32[4,1], index: 5, kind: input, shape index: {}]   ;;  %s483_s6 = inlined_call_operand.hbm [shape: f32[2,4,256], index: 6, kind: output, shape index: {0}]   ;;  %s484_s7 = inlined_call_operand.hbm [shape: f32[2,4,256], index: 7, kind: output, shape index: {1}]  }
   0x1   :  { %14 = vsyncpa [#allocation4], 0 }
   0x2   :  { %15 = vsyncpa [#allocation7], 0  ;;  %s334_s24 = smov [#allocation2]  }
   0x3   :  { %s23_s25 = sshll.u32 %s334_s24, 4  ;;  %s24_s25 = int_to_ptr.vmem [resolvable:$true] %s23_s25 }
   0x4   :  { %s276_s26 = scalar_lea.vmem %s24_s25, 256  ;;  %p281_p1 = scmp.lt.s32.totalorder %s24_s25, %s24_s25 }
   0x5   :  { %p277_p0 = scmp.ne.s32.totalorder %s24_s25, %s276_s26  ;;  %p282_p2 = scmp.lt.s32.totalorder %s276_s26, %s276_s26 }
   0x7   :  { %p283_p3 = por %p282_p2, %p281_p1 }
   0x9   :  { %p284_p4 = pnand %p283_p3, %p277_p0 }
   0xb   :  { %287 = shalt.err (!%p284_p4)
}
   0xc   :  { %s335_s27 = smov 128   ;;  %s336_s28 = smov 8  }
   0xd   :  { %29 = dma.hbm_to_vmem [thread:$0]  %s478_s1, 256, %s24_s25, [#allocation3], %s335_s27, %s335_s27, %s336_s28  }
   0xe   :  { %328 = dma.done.wait [#allocation3], 256  }
   0xf   :  { %329 = vsyncadd [#allocation3], 4294967040  ;;  %vm49_vm0 = vcmask 1043456   ;;  %v390_v0 = vld [vmem:[%s477_s0] sm:$0xff]  ;;  %v395_v1 = vld [vmem:[%s477_s0 + $0x8] sm:$0xff]  ;;  %v66_v28 = vlaneseq }
  0x10   :  { %v397_v2 = vld [vmem:[#allocation2] sm:$0xff]  ;;  %v45_v3 = vcombine.high %v390_v0, %v390_v0  ;;  %v46_v4 = vcombine.high %v395_v1, %v395_v1  ;;  %v50_v5 = vsel %vm49_vm0, %v390_v0, 0.0  ;;  %v51_v6 = vsel %vm49_vm0, %v395_v1, 0.0  ;;  %v407_v7 = vld [vmem:[#allocation2 + $0x8] sm:$0xff] }
  0x11   :  { %v52_v8 = vadd.f32 %v51_v6, %v50_v5  ;;  %v134_v9 = vcombine.high %v397_v2, %v397_v2  ;;  %v135_v10 = vcombine.high %v407_v7, %v407_v7  ;;  %v138_v11 = vsel %vm49_vm0, %v397_v2, 0.0 }
  0x12   :  { %v53_v12 = vsel %vm49_vm0, %v45_v3, 0.0  ;;  %v54_v13 = vsel %vm49_vm0, %v46_v4, 0.0  ;;  %v139_v14 = vsel %vm49_vm0, %v407_v7, 0.0  ;;  %v337_v26 = vmov 839922192  }
  0x13   :  { %v55_v15 = vadd.f32 %v54_v13, %v53_v12  ;;  %v56_v16 = vsel %vm49_vm0, %v52_v8, 0.0  ;;  %v140_v17 = vadd.f32 %v139_v14, %v138_v11  ;;  %v141_v18 = vsel %vm49_vm0, %v134_v9, 0.0 }
  0x14   :  { %v142_v19 = vsel %vm49_vm0, %v135_v10, 0.0  ;;  %v64_v27 = vunpack.c.l.s4 %v337_v26  ;;  %v67_v30 = vshrl.u32 %v66_v28, 7  ;;  %v338_v8 = vmov 0  }
  0x15   :  { %v57_v20 = vsel %vm49_vm0, %v55_v15, 0.0  ;;  %v143_v21 = vadd.f32 %v142_v19, %v141_v18  ;;  %v144_v22 = vsel %vm49_vm0, %v140_v17, 0.0  ;;  %258 = vset.pattern.permute.xlu0 %v338_v8  ;;  %259 = vset.pattern.permute.xlu1 %v338_v8  ;;  %v95_v15 = vld [vmem:[%s479_s2] sm:$0xf]  ;;  %s339_s2 = smov [#allocation5]  }
  0x16   :  { %v58_v23 = vadd.f32 %v57_v20, %v56_v16  ;;  %v65_v29 = vunpack.c.0.s8 %v64_v27  ;;  %v183_v18 = vld [vmem:[%s481_s4] sm:$0xf]  ;;  %s223_s4 = sshll.u32 %s339_s2, 4  ;;  %s224_s4 = int_to_ptr.vmem [resolvable:$true] %s223_s4 }
  0x17   :  { %v145_v24 = vsel %vm49_vm0, %v143_v21, 0.0  ;;  %s288_s18 = scalar_lea.vmem %s224_s4, 256  ;;  %p293_p6 = scmp.lt.s32.totalorder %s224_s4, %s224_s4 }
  0x18   :  { %59 = vadd.xlane.f32.xlu0 %v58_v23  ;;  %v146_v25 = vadd.f32 %v145_v24, %v144_v22  ;;  %v425_v31 = vsub.s32 %v65_v29, %v67_v30  ;;  %v97_v22 = vld [vmem:[%s480_s3] sm:$0xf]  ;;  %s340_s3 = smov [#allocation6]   ;;  %p289_p5 = scmp.ne.s32.totalorder %s224_s4, %s288_s18 }
  0x19   :  { %p294_p7 = scmp.lt.s32.totalorder %s288_s18, %s288_s18 }
  0x1b   :  { %p295_p8 = por %p294_p7, %p293_p6 }
  0x1c   :  { %147 = vadd.xlane.f32.xlu0 %v146_v25  ;;  %v185_v25 = vld [vmem:[%s482_s5] sm:$0xf]  ;;  %s235_s5 = sshll.u32 %s340_s3, 4  ;;  %s236_s5 = int_to_ptr.vmem [resolvable:$true] %s235_s5 }
  0x1d   :  { %p296_p9 = pnand %p295_p8, %p289_p5 }
  0xa1   :  { %v60_v32 = vpop.xlane.xlu0 %59 }
  0xa2   :  { %v61_v33 = vmul.f32 0.001953125, %v60_v32 }
  0xa4   :  { %v69_v34 = vrot.slane %v61_v33, %v425_v31 }
  0xa5   :  { %v148_v35 = vpop.xlane.xlu0 %147 }
  0xa6   :  { %v71_v36 = vsub.f32 %v390_v0, %v69_v34  ;;  %v72_v37 = vsub.f32 %v395_v1, %v69_v34  ;;  %v149_v38 = vmul.f32 0.001953125, %v148_v35 }
  0xa8   :  { %v73_v39 = vmul.f32 %v71_v36, %v71_v36  ;;  %v74_v40 = vmul.f32 %v72_v37, %v72_v37  ;;  %v157_v41 = vrot.slane %v149_v38, %v425_v31 }
  0xaa   :  { %v159_v42 = vsub.f32 %v397_v2, %v157_v41  ;;  %v160_v43 = vsub.f32 %v407_v7, %v157_v41  ;;  %v77_v44 = vcombine.high %v73_v39, %v73_v39  ;;  %v78_v45 = vcombine.high %v74_v40, %v74_v40 }
  0xab   :  { %v81_v46 = vsel %vm49_vm0, %v73_v39, 0.0  ;;  %v82_v47 = vsel %vm49_vm0, %v74_v40, 0.0 }
  0xac   :  { %v161_v48 = vmul.f32 %v159_v42, %v159_v42  ;;  %v162_v49 = vmul.f32 %v160_v43, %v160_v43  ;;  %v83_v50 = vadd.f32 %v82_v47, %v81_v46  ;;  %v84_v51 = vsel %vm49_vm0, %v77_v44, 0.0 }
  0xad   :  { %v85_v52 = vsel %vm49_vm0, %v78_v45, 0.0 }
  0xae   :  { %v165_v53 = vcombine.high %v161_v48, %v161_v48  ;;  %v166_v54 = vcombine.high %v162_v49, %v162_v49  ;;  %v86_v55 = vadd.f32 %v85_v52, %v84_v51  ;;  %v87_v56 = vsel %vm49_vm0, %v83_v50, 0.0 }
  0xaf   :  { %v169_v57 = vsel %vm49_vm0, %v161_v48, 0.0  ;;  %v170_v58 = vsel %vm49_vm0, %v162_v49, 0.0 }
  0xb0   :  { %v88_v59 = vsel %vm49_vm0, %v86_v55, 0.0  ;;  %v171_v60 = vadd.f32 %v170_v58, %v169_v57  ;;  %v172_v61 = vsel %vm49_vm0, %v165_v53, 0.0  ;;  %v173_v62 = vsel %vm49_vm0, %v166_v54, 0.0 }
  0xb1   :  { %v89_v63 = vadd.f32 %v88_v59, %v87_v56  ;;  %v174_v3 = vadd.f32 %v173_v62, %v172_v61 }
  0xb2   :  { %v175_v4 = vsel %vm49_vm0, %v171_v60, 0.0 }
  0xb3   :  { %90 = vadd.xlane.f32.xlu1 %v89_v63  ;;  %v176_v5 = vsel %vm49_vm0, %v174_v3, 0.0 }
  0xb4   :  { %v177_v6 = vadd.f32 %v176_v5, %v175_v4 }
  0xb7   :  { %178 = vadd.xlane.f32.xlu1 %v177_v6 }
 0x13c   :  { %v91_v9 = vpop.xlane.xlu1 %90 }
 0x13d   :  { %v92_v10 = vmul.f32 0.001953125, %v91_v9 }
 0x13f   :  { %v93_v11 = vadd.f32 1e-05, %v92_v10 }
 0x140   :  { %v179_v12 = vpop.xlane.xlu1 %178 }
 0x141   :  { %264 = vrsqrt.f32 %v93_v11  ;;  %v180_v13 = vmul.f32 0.001953125, %v179_v12 }
 0x143   :  { %v181_v14 = vadd.f32 1e-05, %v180_v13 }
 0x145   :  { %266 = vrsqrt.f32 %v181_v14 }
 0x14e   :  { %v265_v16 = vpop.eup %264 }
 0x14f   :  { %v96_v17 = vmul.f32 %v265_v16, %v95_v15 }
 0x151   :  { %102 = vperm.xlu0 %258, %v96_v17   ;;  %v98_v21 = vmul.f32 %v96_v17, %v61_v33 }
 0x152   :  { %v267_v19 = vpop.eup %266 }
 0x153   :  { %v184_v20 = vmul.f32 %v267_v19, %v183_v18  ;;  %v99_v23 = vsub.f32 %v97_v22, %v98_v21 }
 0x155   :  { %190 = vperm.xlu1 %259, %v184_v20   ;;  %v186_v24 = vmul.f32 %v184_v20, %v149_v38 }
 0x157   :  { %v187_v26 = vsub.f32 %v185_v25, %v186_v24 }
 0x159   :  { %116 = vperm.xlu1 %259, %v99_v23  }
 0x15d   :  { %204 = vperm.xlu1 %259, %v187_v26  }
 0x1cc   :  { %v103_v27 = vpop.permute.xlu0 %102 }
 0x1cd   :  { %v110_v29 = vrot.slane %v103_v27, %v425_v31 }
 0x1cf   :  { %v112_v32 = vmul.f32 %v110_v29, %v390_v0  ;;  %v113_v33 = vmul.f32 %v110_v29, %v395_v1 }
 0x1d0   :  { %v191_v28 = vpop.permute.xlu1 %190 }
 0x1d1   :  { %v198_v34 = vrot.slane %v191_v28, %v425_v31 }
 0x1d3   :  { %v200_v39 = vmul.f32 %v198_v34, %v397_v2  ;;  %v201_v40 = vmul.f32 %v198_v34, %v407_v7 }
 0x1d4   :  { %v117_v30 = vpop.permute.xlu1 %116 }
 0x1d5   :  { %v124_v35 = vrot.slane %v117_v30, %v425_v31 }
 0x1d7   :  { %v126_v36 = vadd.f32 %v124_v35, %v112_v32  ;;  %v127_v37 = vadd.f32 %v124_v35, %v113_v33 }
 0x1d8   :  { %v205_v38 = vpop.permute.xlu1 %204 }
 0x1d9   :  { %128 = vst [vmem:[#allocation5] sm:$0xff] %v126_v36  ;;  %129 = vst [vmem:[#allocation5 + $0x8] sm:$0xff] %v127_v37  ;;  %v212_v0 = vrot.slane %v205_v38, %v425_v31 }
 0x1da   :  { %299 = shalt.err (!%p296_p9)
}
 0x1db   :  { %229 = dma.vmem_to_hbm [thread:$0]  %s224_s4, 256, %s483_s6, [#allocation4], %s335_s27, %s335_s27, %s336_s28   ;;  %v214_v1 = vadd.f32 %v212_v0, %v200_v39  ;;  %v215_v2 = vadd.f32 %v212_v0, %v201_v40 }
 0x1dc   :  { %s308_s21 = scalar_lea.vmem %s236_s5, 256  ;;  %p313_p11 = scmp.lt.s32.totalorder %s236_s5, %s236_s5 }
 0x1dd   :  { %216 = vst [vmem:[#allocation6] sm:$0xff] %v214_v1  ;;  %217 = vst [vmem:[#allocation6 + $0x8] sm:$0xff] %v215_v2  ;;  %p309_p10 = scmp.ne.s32.totalorder %s236_s5, %s308_s21  ;;  %p314_p12 = scmp.lt.s32.totalorder %s308_s21, %s308_s21 }
 0x1df   :  { %p315_p13 = por %p314_p12, %p313_p11 }
 0x1e1   :  { %p316_p0 = pnand %p315_p13, %p309_p10 }
 0x1e3   :  { %319 = shalt.err (!%p316_p0)
}
 0x1e4   :  { %241 = dma.vmem_to_hbm [thread:$0]  %s236_s5, 256, %s484_s7, [#allocation7], %s335_s27, %s335_s27, %s336_s28  }
 0x1e5   :  { %330 = dma.done.wait [#allocation4], 256  }
 0x1e6   :  { %331 = vsyncadd [#allocation4], 4294967040 }
 0x1e7   :  { %332 = dma.done.wait [#allocation7], 256  }
 0x1e8   :  { %333 = vsyncadd [#allocation7], 4294967040 }
 0x1e9   :  { %248 = vsyncpa [#allocation3], 1 }
 0x1ea   :  { %249 = vsyncpa [#allocation4], 1 }
 0x1eb   :  { %250 = vsyncpa [#allocation7], 1 }

</bundles_post_ra>
